<compile_context>
chip_gen: v6e
topology: v6e:2x2x1
jax: 0.10.0
libtpu: 0.0.40
codegen_flags: <defaults>
</compile_context>

<pallas_src>
import functools

import jax
import jax.numpy as jnp
from jax import lax
from jax.experimental import pallas as pl
from jax.experimental.pallas import tpu as pltpu

H1 = 256
H2 = 128
LN_EPS = 1e-5


def _round_up(n, m):
    return ((n + m - 1) // m) * m


def _ln_relu(h, g, b):
    mu = jnp.mean(h, axis=-1, keepdims=True)
    var = jnp.mean((h - mu) * (h - mu), axis=-1, keepdims=True)
    hn = (h - mu) * lax.rsqrt(var + LN_EPS)
    return jnp.maximum(hn * g + b, 0.0)


def _ppo_kernel(x_ref, w1_ref, w2_ref, w3_ref, rows_ref, out_ref, *,
                output_dim, slab):
    tb = x_ref.shape[0]
    x = x_ref[...].astype(jnp.bfloat16)

    rows = rows_ref[...]                                   # (8, ROW_W) f32
    b1, g1, be1 = rows[0:1, :2 * H1], rows[1:2, :2 * H1], rows[2:3, :2 * H1]
    b2, g2, be2 = rows[3:4, :2 * H2], rows[4:5, :2 * H2], rows[5:6, :2 * H2]
    b3p = rows[6:7, :slab]
    w3v = rows[7:8, :H2]
    b3v = rows[7:8, H2:H2 + 1]                             # (1, 1)

    # ---- fused first layer: both heads share x -> one (in, 512) matmul ----
    h1 = jnp.dot(x, w1_ref[...], preferred_element_type=jnp.float32) + b1
    hp = _ln_relu(h1[:, :H1], g1[:, :H1], be1[:, :H1])     # policy half
    hv = _ln_relu(h1[:, H1:], g1[:, H1:], be1[:, H1:])     # value half

    # ---- second layers (per head) ----
    h2p = jnp.dot(hp.astype(jnp.bfloat16), w2_ref[0],
                  preferred_element_type=jnp.float32) + b2[:, :H2]
    h2v = jnp.dot(hv.astype(jnp.bfloat16), w2_ref[1],
                  preferred_element_type=jnp.float32) + b2[:, H2:]
    h2p = _ln_relu(h2p, g2[:, :H2], be2[:, :H2])
    h2v = _ln_relu(h2v, g2[:, H2:], be2[:, H2:])

    # ---- policy logits over a lane-dense slab (zero-padded weight columns) ----
    logits = jnp.dot(h2p.astype(jnp.bfloat16), w3_ref[...],
                     preferred_element_type=jnp.float32) + b3p   # (tb, slab)

    lane = lax.broadcasted_iota(jnp.int32, (tb, slab), 1)
    valid = lane < output_dim
    m = jnp.max(jnp.where(valid, logits, -jnp.inf), axis=-1, keepdims=True)
    s = logits - m
    e = jnp.where(valid, jnp.exp(s), 0.0)
    lse = jnp.log(jnp.sum(e, axis=-1, keepdims=True))
    logp = s - lse

    # ---- value head final projection on VPU/XLU (no MXU pass, no 1-lane store) ----
    val = jnp.sum(h2v * w3v, axis=-1, keepdims=True) + b3v       # (tb, 1)

    # single lane-dense output slab: log-probs in [0, output_dim), value elsewhere
    out_ref[...] = jnp.where(valid, logp, val)


def pack_params(params, output_dim):
    """Pack the 20 PyTorch-layout arrays into 4 kernel operands."""
    (w1p, b1p, g1p, be1p, w2p, b2p, g2p, be2p, w3p, b3p,
     w1v, b1v, g1v, be1v, w2v, b2v, g2v, be2v, w3v, b3v) = params

    slab = _round_up(output_dim + 1, 128)
    row_w = max(2 * H1, slab)

    w1 = jnp.concatenate([w1p, w1v], axis=1).astype(jnp.bfloat16)   # (in, 512)
    w2 = jnp.stack([w2p, w2v], axis=0).astype(jnp.bfloat16)         # (2, 256, 128)
    w3 = jnp.zeros((H2, slab), jnp.float32).at[:, :output_dim].set(w3p)
    w3 = w3.astype(jnp.bfloat16)                                    # (128, slab)

    def row(*parts):
        r = jnp.concatenate([p.reshape(-1).astype(jnp.float32) for p in parts])
        return jnp.zeros((row_w,), jnp.float32).at[:r.shape[0]].set(r)

    rows = jnp.stack([
        row(b1p, b1v), row(g1p, g1v), row(be1p, be1v),
        row(b2p, b2v), row(g2p, g2v), row(be2p, be2v),
        row(b3p),
        row(w3v, b3v),           # w3v flattened to lanes [0,128), b3v at lane 128
    ], axis=0)                                                      # (8, row_w) f32
    return w1, w2, w3, rows


def othello_ppo_forward(x, packed, *, output_dim):
    """x: (B, input_dim) f32. packed: (w1, w2, w3, rows) from pack_params."""
    w1, w2, w3, rows = packed
    B, input_dim = x.shape
    slab = w3.shape[1]
    row_w = rows.shape[1]

    tb = min(B, 512)
    b_pad = _round_up(B, tb)
    if b_pad != B:
        x = jnp.pad(x, ((0, b_pad - B), (0, 0)))

    kernel = functools.partial(_ppo_kernel, output_dim=output_dim, slab=slab)
    out = pl.pallas_call(
        kernel,
        grid=(b_pad // tb,),
        in_specs=[
            pl.BlockSpec((tb, input_dim), lambda i: (i, 0)),      # x batch tile
            pl.BlockSpec((input_dim, 2 * H1), lambda i: (0, 0)),  # fused W1
            pl.BlockSpec((2, H1, H2), lambda i: (0, 0, 0)),       # stacked W2
            pl.BlockSpec((H2, slab), lambda i: (0, 0)),           # padded W3 (policy)
            pl.BlockSpec((8, row_w), lambda i: (0, 0)),           # packed rows
        ],
        out_specs=pl.BlockSpec((tb, slab), lambda i: (i, 0)),
        out_shape=jax.ShapeDtypeStruct((b_pad, slab), jnp.float32),
        compiler_params=pltpu.CompilerParams(
            dimension_semantics=("parallel",)),
    )(x, w1, w2, w3, rows)

    policy_logits = out[:B, :output_dim]
    value = out[:B, output_dim:output_dim + 1]
    return policy_logits, value


def _xavier_uniform(key, fan_in, fan_out):
    bound = (6.0 / (fan_in + fan_out)) ** 0.5
    return jax.random.uniform(
        key, (fan_in, fan_out), jnp.float32, minval=-bound, maxval=bound
    )


def init_params(key, input_dim, output_dim):
    """Matches the PyTorch init: xavier_uniform weights, biases=0.01, LN gamma=1 beta=0."""
    keys = jax.random.split(key, 6)

    def head(ks, out_dim):
        w1 = _xavier_uniform(ks[0], input_dim, H1)
        b1 = jnp.full((1, H1), 0.01, jnp.float32)
        g1 = jnp.ones((1, H1), jnp.float32)
        be1 = jnp.zeros((1, H1), jnp.float32)
        w2 = _xavier_uniform(ks[1], H1, H2)
        b2 = jnp.full((1, H2), 0.01, jnp.float32)
        g2 = jnp.ones((1, H2), jnp.float32)
        be2 = jnp.zeros((1, H2), jnp.float32)
        w3 = _xavier_uniform(ks[2], H2, out_dim)
        b3 = jnp.full((1, out_dim), 0.01, jnp.float32)
        return (w1, b1, g1, be1, w2, b2, g2, be2, w3, b3)

    policy = head(keys[0:3], output_dim)
    value = head(keys[3:6], 1)
    return policy + value


def _reference_forward(x, params):
    """Pure-JAX reference emulating the kernel's bf16-weight / f32-accum path."""
    (w1p, b1p, g1p, be1p, w2p, b2p, g2p, be2p, w3p, b3p,
     w1v, b1v, g1v, be1v, w2v, b2v, g2v, be2v, w3v, b3v) = params

    def dot(a, w):
        return jnp.dot(a.astype(jnp.bfloat16), w.astype(jnp.bfloat16),
                       preferred_element_type=jnp.float32)

    def ln_relu(h, g, b):
        mu = jnp.mean(h, -1, keepdims=True)
        var = jnp.mean((h - mu) ** 2, -1, keepdims=True)
        return jnp.maximum((h - mu) / jnp.sqrt(var + LN_EPS) * g + b, 0.0)

    h = ln_relu(dot(x, w1p) + b1p, g1p, be1p)
    h = ln_relu(dot(h, w2p) + b2p, g2p, be2p)
    logits = dot(h, w3p) + b3p
    pol = jax.nn.log_softmax(logits, axis=-1)

    v = ln_relu(dot(x, w1v) + b1v, g1v, be1v)
    v = ln_relu(dot(v, w2v) + b2v, g2v, be2v)
    val = jnp.sum(v * w3v.reshape(1, -1), -1, keepdims=True) + b3v
    return pol, val


if __name__ == "__main__":
    key = jax.random.PRNGKey(0)
    k_x, k_p = jax.random.split(key)

    batch, input_dim, output_dim = 8, 64, 64  # 8x8 Othello board -> 64 moves
    x = jax.random.normal(k_x, (batch, input_dim), jnp.float32)
    params = init_params(k_p, input_dim, output_dim)
    packed = pack_params(params, output_dim)

    fwd = jax.jit(functools.partial(othello_ppo_forward, output_dim=output_dim))
    policy_logits, value = fwd(x, packed)
    jax.block_until_ready((policy_logits, value))

    ref_pol, ref_val = _reference_forward(x, params)
    assert policy_logits.shape == (batch, output_dim)
    assert value.shape == (batch, 1)
    assert jnp.allclose(policy_logits, ref_pol, atol=2e-2, rtol=2e-2), \
        float(jnp.max(jnp.abs(policy_logits - ref_pol)))
    assert jnp.allclose(value, ref_val, atol=2e-2, rtol=2e-2), \
        float(jnp.max(jnp.abs(value - ref_val)))

    print("KERNEL_OK")
</pallas_src>

<mosaic_0001>
module attributes {stable_mosaic.version = 11 : i64} {
  func.func @_ppo_kernel(%arg0: i32, %arg1: memref<8x64xf32, #tpu.memory_space<vmem>>, %arg2: memref<64x512xbf16, #tpu.memory_space<vmem>>, %arg3: memref<2x256x128xbf16, #tpu.memory_space<vmem>>, %arg4: memref<128x128xbf16, #tpu.memory_space<vmem>>, %arg5: memref<8x512xf32, #tpu.memory_space<vmem>>, %arg6: memref<8x128xf32, #tpu.memory_space<vmem>>) attributes {dimension_semantics = [#tpu.dimension_semantics<parallel>], iteration_bounds = array<i64: 1>, scalar_prefetch = 0 : i64, scratch_operands = 0 : i64, tpu.core_type = #tpu.core_type<tc>, window_params = [{transform_indices = @transform_0, window_bounds = array<i64: 8, 64>}, {pipeline_mode = #tpu.pipeline_mode<synchronous>, transform_indices = @transform_1, window_bounds = array<i64: 64, 512>}, {pipeline_mode = #tpu.pipeline_mode<synchronous>, transform_indices = @transform_2, window_bounds = array<i64: 2, 256, 128>}, {pipeline_mode = #tpu.pipeline_mode<synchronous>, transform_indices = @transform_3, window_bounds = array<i64: 128, 128>}, {pipeline_mode = #tpu.pipeline_mode<synchronous>, transform_indices = @transform_4, window_bounds = array<i64: 8, 512>}, {transform_indices = @transform_5, window_bounds = array<i64: 8, 128>}]} {
    %c0 = arith.constant 0 : index
    %c0_0 = arith.constant 0 : index
    %0 = vector.load %arg1[%c0, %c0_0] : memref<8x64xf32, #tpu.memory_space<vmem>>, vector<8x64xf32>
    %1 = arith.truncf %0 : vector<8x64xf32> to vector<8x64xbf16>
    %c0_1 = arith.constant 0 : index
    %c0_2 = arith.constant 0 : index
    %2 = vector.load %arg5[%c0_1, %c0_2] : memref<8x512xf32, #tpu.memory_space<vmem>>, vector<8x512xf32>
    %3 = vector.extract_strided_slice %2 {offsets = [0, 0], sizes = [1, 512], strides = [1, 1]} : vector<8x512xf32> to vector<1x512xf32>
    %4 = vector.extract_strided_slice %2 {offsets = [1, 0], sizes = [1, 512], strides = [1, 1]} : vector<8x512xf32> to vector<1x512xf32>
    %5 = vector.extract_strided_slice %2 {offsets = [2, 0], sizes = [1, 512], strides = [1, 1]} : vector<8x512xf32> to vector<1x512xf32>
    %6 = vector.extract_strided_slice %2 {offsets = [3, 0], sizes = [1, 256], strides = [1, 1]} : vector<8x512xf32> to vector<1x256xf32>
    %7 = vector.extract_strided_slice %2 {offsets = [4, 0], sizes = [1, 256], strides = [1, 1]} : vector<8x512xf32> to vector<1x256xf32>
    %8 = vector.extract_strided_slice %2 {offsets = [5, 0], sizes = [1, 256], strides = [1, 1]} : vector<8x512xf32> to vector<1x256xf32>
    %9 = vector.extract_strided_slice %2 {offsets = [6, 0], sizes = [1, 128], strides = [1, 1]} : vector<8x512xf32> to vector<1x128xf32>
    %10 = vector.extract_strided_slice %2 {offsets = [7, 0], sizes = [1, 128], strides = [1, 1]} : vector<8x512xf32> to vector<1x128xf32>
    %11 = vector.extract_strided_slice %2 {offsets = [7, 128], sizes = [1, 1], strides = [1, 1]} : vector<8x512xf32> to vector<1x1xf32>
    %c0_3 = arith.constant 0 : index
    %c0_4 = arith.constant 0 : index
    %12 = vector.load %arg2[%c0_3, %c0_4] : memref<64x512xbf16, #tpu.memory_space<vmem>>, vector<64x512xbf16>
    %cst = arith.constant dense<0.000000e+00> : vector<8x512xf32>
    %13 = tpu.matmul %1, %12, %cst {dimension_numbers = #tpu.dot_dimension_numbers<[1], [0], [0], [1], [0, 0, 1, 1], [], []>} : vector<8x64xbf16>, vector<64x512xbf16>, vector<8x512xf32> -> vector<8x512xf32>
    %14 = vector.broadcast %3 : vector<1x512xf32> to vector<8x512xf32>
    %15 = arith.addf %13, %14 : vector<8x512xf32>
    %16 = vector.extract_strided_slice %15 {offsets = [0, 0], sizes = [8, 256], strides = [1, 1]} : vector<8x512xf32> to vector<8x256xf32>
    %17 = vector.extract_strided_slice %4 {offsets = [0, 0], sizes = [1, 256], strides = [1, 1]} : vector<1x512xf32> to vector<1x256xf32>
    %18 = vector.extract_strided_slice %5 {offsets = [0, 0], sizes = [1, 256], strides = [1, 1]} : vector<1x512xf32> to vector<1x256xf32>
    %cst_5 = arith.constant dense<0.000000e+00> : vector<8xf32>
    %19 = vector.multi_reduction <add>, %16, %cst_5 [1] : vector<8x256xf32> to vector<8xf32>
    %20 = vector.shape_cast %19 : vector<8xf32> to vector<8x1xf32>
    %cst_6 = arith.constant 2.560000e+02 : f32
    %21 = vector.broadcast %cst_6 : f32 to vector<8x1xf32>
    %22 = arith.divf %20, %21 : vector<8x1xf32>
    %23 = vector.broadcast %22 : vector<8x1xf32> to vector<8x256xf32>
    %24 = arith.subf %16, %23 : vector<8x256xf32>
    %25 = vector.broadcast %22 : vector<8x1xf32> to vector<8x256xf32>
    %26 = arith.subf %16, %25 : vector<8x256xf32>
    %27 = arith.mulf %24, %26 : vector<8x256xf32>
    %cst_7 = arith.constant dense<0.000000e+00> : vector<8xf32>
    %28 = vector.multi_reduction <add>, %27, %cst_7 [1] : vector<8x256xf32> to vector<8xf32>
    %29 = vector.shape_cast %28 : vector<8xf32> to vector<8x1xf32>
    %cst_8 = arith.constant 2.560000e+02 : f32
    %30 = vector.broadcast %cst_8 : f32 to vector<8x1xf32>
    %31 = arith.divf %29, %30 : vector<8x1xf32>
    %32 = vector.broadcast %22 : vector<8x1xf32> to vector<8x256xf32>
    %33 = arith.subf %16, %32 : vector<8x256xf32>
    %cst_9 = arith.constant 9.99999974E-6 : f32
    %34 = vector.broadcast %cst_9 : f32 to vector<8x1xf32>
    %35 = arith.addf %31, %34 : vector<8x1xf32>
    %36 = math.rsqrt %35 : vector<8x1xf32>
    %37 = vector.broadcast %36 : vector<8x1xf32> to vector<8x256xf32>
    %38 = arith.mulf %33, %37 : vector<8x256xf32>
    %39 = vector.broadcast %17 : vector<1x256xf32> to vector<8x256xf32>
    %40 = arith.mulf %38, %39 : vector<8x256xf32>
    %41 = vector.broadcast %18 : vector<1x256xf32> to vector<8x256xf32>
    %42 = arith.addf %40, %41 : vector<8x256xf32>
    %cst_10 = arith.constant 0.000000e+00 : f32
    %43 = vector.broadcast %cst_10 : f32 to vector<8x256xf32>
    %44 = arith.maximumf %42, %43 : vector<8x256xf32>
    %45 = vector.extract_strided_slice %15 {offsets = [0, 256], sizes = [8, 256], strides = [1, 1]} : vector<8x512xf32> to vector<8x256xf32>
    %46 = vector.extract_strided_slice %4 {offsets = [0, 256], sizes = [1, 256], strides = [1, 1]} : vector<1x512xf32> to vector<1x256xf32>
    %47 = vector.extract_strided_slice %5 {offsets = [0, 256], sizes = [1, 256], strides = [1, 1]} : vector<1x512xf32> to vector<1x256xf32>
    %cst_11 = arith.constant dense<0.000000e+00> : vector<8xf32>
    %48 = vector.multi_reduction <add>, %45, %cst_11 [1] : vector<8x256xf32> to vector<8xf32>
    %49 = vector.shape_cast %48 : vector<8xf32> to vector<8x1xf32>
    %cst_12 = arith.constant 2.560000e+02 : f32
    %50 = vector.broadcast %cst_12 : f32 to vector<8x1xf32>
    %51 = arith.divf %49, %50 : vector<8x1xf32>
    %52 = vector.broadcast %51 : vector<8x1xf32> to vector<8x256xf32>
    %53 = arith.subf %45, %52 : vector<8x256xf32>
    %54 = vector.broadcast %51 : vector<8x1xf32> to vector<8x256xf32>
    %55 = arith.subf %45, %54 : vector<8x256xf32>
    %56 = arith.mulf %53, %55 : vector<8x256xf32>
    %cst_13 = arith.constant dense<0.000000e+00> : vector<8xf32>
    %57 = vector.multi_reduction <add>, %56, %cst_13 [1] : vector<8x256xf32> to vector<8xf32>
    %58 = vector.shape_cast %57 : vector<8xf32> to vector<8x1xf32>
    %cst_14 = arith.constant 2.560000e+02 : f32
    %59 = vector.broadcast %cst_14 : f32 to vector<8x1xf32>
    %60 = arith.divf %58, %59 : vector<8x1xf32>
    %61 = vector.broadcast %51 : vector<8x1xf32> to vector<8x256xf32>
    %62 = arith.subf %45, %61 : vector<8x256xf32>
    %cst_15 = arith.constant 9.99999974E-6 : f32
    %63 = vector.broadcast %cst_15 : f32 to vector<8x1xf32>
    %64 = arith.addf %60, %63 : vector<8x1xf32>
    %65 = math.rsqrt %64 : vector<8x1xf32>
    %66 = vector.broadcast %65 : vector<8x1xf32> to vector<8x256xf32>
    %67 = arith.mulf %62, %66 : vector<8x256xf32>
    %68 = vector.broadcast %46 : vector<1x256xf32> to vector<8x256xf32>
    %69 = arith.mulf %67, %68 : vector<8x256xf32>
    %70 = vector.broadcast %47 : vector<1x256xf32> to vector<8x256xf32>
    %71 = arith.addf %69, %70 : vector<8x256xf32>
    %cst_16 = arith.constant 0.000000e+00 : f32
    %72 = vector.broadcast %cst_16 : f32 to vector<8x256xf32>
    %73 = arith.maximumf %71, %72 : vector<8x256xf32>
    %74 = arith.truncf %44 : vector<8x256xf32> to vector<8x256xbf16>
    %c0_17 = arith.constant 0 : index
    %c0_18 = arith.constant 0 : index
    %c0_19 = arith.constant 0 : index
    %75 = vector.load %arg3[%c0_17, %c0_18, %c0_19] : memref<2x256x128xbf16, #tpu.memory_space<vmem>>, vector<1x256x128xbf16>
    %76 = vector.shape_cast %75 : vector<1x256x128xbf16> to vector<256x128xbf16>
    %cst_20 = arith.constant dense<0.000000e+00> : vector<8x128xf32>
    %77 = tpu.matmul %74, %76, %cst_20 {dimension_numbers = #tpu.dot_dimension_numbers<[1], [0], [0], [1], [0, 0, 1, 1], [], []>} : vector<8x256xbf16>, vector<256x128xbf16>, vector<8x128xf32> -> vector<8x128xf32>
    %78 = vector.extract_strided_slice %6 {offsets = [0, 0], sizes = [1, 128], strides = [1, 1]} : vector<1x256xf32> to vector<1x128xf32>
    %79 = vector.broadcast %78 : vector<1x128xf32> to vector<8x128xf32>
    %80 = arith.addf %77, %79 : vector<8x128xf32>
    %81 = arith.truncf %73 : vector<8x256xf32> to vector<8x256xbf16>
    %c1 = arith.constant 1 : index
    %c0_21 = arith.constant 0 : index
    %c0_22 = arith.constant 0 : index
    %82 = vector.load %arg3[%c1, %c0_21, %c0_22] : memref<2x256x128xbf16, #tpu.memory_space<vmem>>, vector<1x256x128xbf16>
    %83 = vector.shape_cast %82 : vector<1x256x128xbf16> to vector<256x128xbf16>
    %cst_23 = arith.constant dense<0.000000e+00> : vector<8x128xf32>
    %84 = tpu.matmul %81, %83, %cst_23 {dimension_numbers = #tpu.dot_dimension_numbers<[1], [0], [0], [1], [0, 0, 1, 1], [], []>} : vector<8x256xbf16>, vector<256x128xbf16>, vector<8x128xf32> -> vector<8x128xf32>
    %85 = vector.extract_strided_slice %6 {offsets = [0, 128], sizes = [1, 128], strides = [1, 1]} : vector<1x256xf32> to vector<1x128xf32>
    %86 = vector.broadcast %85 : vector<1x128xf32> to vector<8x128xf32>
    %87 = arith.addf %84, %86 : vector<8x128xf32>
    %88 = vector.extract_strided_slice %7 {offsets = [0, 0], sizes = [1, 128], strides = [1, 1]} : vector<1x256xf32> to vector<1x128xf32>
    %89 = vector.extract_strided_slice %8 {offsets = [0, 0], sizes = [1, 128], strides = [1, 1]} : vector<1x256xf32> to vector<1x128xf32>
    %cst_24 = arith.constant dense<0.000000e+00> : vector<8xf32>
    %90 = vector.multi_reduction <add>, %80, %cst_24 [1] : vector<8x128xf32> to vector<8xf32>
    %91 = vector.shape_cast %90 : vector<8xf32> to vector<8x1xf32>
    %cst_25 = arith.constant 1.280000e+02 : f32
    %92 = vector.broadcast %cst_25 : f32 to vector<8x1xf32>
    %93 = arith.divf %91, %92 : vector<8x1xf32>
    %94 = vector.broadcast %93 : vector<8x1xf32> to vector<8x128xf32>
    %95 = arith.subf %80, %94 : vector<8x128xf32>
    %96 = vector.broadcast %93 : vector<8x1xf32> to vector<8x128xf32>
    %97 = arith.subf %80, %96 : vector<8x128xf32>
    %98 = arith.mulf %95, %97 : vector<8x128xf32>
    %cst_26 = arith.constant dense<0.000000e+00> : vector<8xf32>
    %99 = vector.multi_reduction <add>, %98, %cst_26 [1] : vector<8x128xf32> to vector<8xf32>
    %100 = vector.shape_cast %99 : vector<8xf32> to vector<8x1xf32>
    %cst_27 = arith.constant 1.280000e+02 : f32
    %101 = vector.broadcast %cst_27 : f32 to vector<8x1xf32>
    %102 = arith.divf %100, %101 : vector<8x1xf32>
    %103 = vector.broadcast %93 : vector<8x1xf32> to vector<8x128xf32>
    %104 = arith.subf %80, %103 : vector<8x128xf32>
    %cst_28 = arith.constant 9.99999974E-6 : f32
    %105 = vector.broadcast %cst_28 : f32 to vector<8x1xf32>
    %106 = arith.addf %102, %105 : vector<8x1xf32>
    %107 = math.rsqrt %106 : vector<8x1xf32>
    %108 = vector.broadcast %107 : vector<8x1xf32> to vector<8x128xf32>
    %109 = arith.mulf %104, %108 : vector<8x128xf32>
    %110 = vector.broadcast %88 : vector<1x128xf32> to vector<8x128xf32>
    %111 = arith.mulf %109, %110 : vector<8x128xf32>
    %112 = vector.broadcast %89 : vector<1x128xf32> to vector<8x128xf32>
    %113 = arith.addf %111, %112 : vector<8x128xf32>
    %cst_29 = arith.constant 0.000000e+00 : f32
    %114 = vector.broadcast %cst_29 : f32 to vector<8x128xf32>
    %115 = arith.maximumf %113, %114 : vector<8x128xf32>
    %116 = vector.extract_strided_slice %7 {offsets = [0, 128], sizes = [1, 128], strides = [1, 1]} : vector<1x256xf32> to vector<1x128xf32>
    %117 = vector.extract_strided_slice %8 {offsets = [0, 128], sizes = [1, 128], strides = [1, 1]} : vector<1x256xf32> to vector<1x128xf32>
    %cst_30 = arith.constant dense<0.000000e+00> : vector<8xf32>
    %118 = vector.multi_reduction <add>, %87, %cst_30 [1] : vector<8x128xf32> to vector<8xf32>
    %119 = vector.shape_cast %118 : vector<8xf32> to vector<8x1xf32>
    %cst_31 = arith.constant 1.280000e+02 : f32
    %120 = vector.broadcast %cst_31 : f32 to vector<8x1xf32>
    %121 = arith.divf %119, %120 : vector<8x1xf32>
    %122 = vector.broadcast %121 : vector<8x1xf32> to vector<8x128xf32>
    %123 = arith.subf %87, %122 : vector<8x128xf32>
    %124 = vector.broadcast %121 : vector<8x1xf32> to vector<8x128xf32>
    %125 = arith.subf %87, %124 : vector<8x128xf32>
    %126 = arith.mulf %123, %125 : vector<8x128xf32>
    %cst_32 = arith.constant dense<0.000000e+00> : vector<8xf32>
    %127 = vector.multi_reduction <add>, %126, %cst_32 [1] : vector<8x128xf32> to vector<8xf32>
    %128 = vector.shape_cast %127 : vector<8xf32> to vector<8x1xf32>
    %cst_33 = arith.constant 1.280000e+02 : f32
    %129 = vector.broadcast %cst_33 : f32 to vector<8x1xf32>
    %130 = arith.divf %128, %129 : vector<8x1xf32>
    %131 = vector.broadcast %121 : vector<8x1xf32> to vector<8x128xf32>
    %132 = arith.subf %87, %131 : vector<8x128xf32>
    %cst_34 = arith.constant 9.99999974E-6 : f32
    %133 = vector.broadcast %cst_34 : f32 to vector<8x1xf32>
    %134 = arith.addf %130, %133 : vector<8x1xf32>
    %135 = math.rsqrt %134 : vector<8x1xf32>
    %136 = vector.broadcast %135 : vector<8x1xf32> to vector<8x128xf32>
    %137 = arith.mulf %132, %136 : vector<8x128xf32>
    %138 = vector.broadcast %116 : vector<1x128xf32> to vector<8x128xf32>
    %139 = arith.mulf %137, %138 : vector<8x128xf32>
    %140 = vector.broadcast %117 : vector<1x128xf32> to vector<8x128xf32>
    %141 = arith.addf %139, %140 : vector<8x128xf32>
    %cst_35 = arith.constant 0.000000e+00 : f32
    %142 = vector.broadcast %cst_35 : f32 to vector<8x128xf32>
    %143 = arith.maximumf %141, %142 : vector<8x128xf32>
    %144 = arith.truncf %115 : vector<8x128xf32> to vector<8x128xbf16>
    %c0_36 = arith.constant 0 : index
    %c0_37 = arith.constant 0 : index
    %145 = vector.load %arg4[%c0_36, %c0_37] : memref<128x128xbf16, #tpu.memory_space<vmem>>, vector<128x128xbf16>
    %cst_38 = arith.constant dense<0.000000e+00> : vector<8x128xf32>
    %146 = tpu.matmul %144, %145, %cst_38 {dimension_numbers = #tpu.dot_dimension_numbers<[1], [0], [0], [1], [0, 0, 1, 1], [], []>} : vector<8x128xbf16>, vector<128x128xbf16>, vector<8x128xf32> -> vector<8x128xf32>
    %147 = vector.broadcast %9 : vector<1x128xf32> to vector<8x128xf32>
    %148 = arith.addf %146, %147 : vector<8x128xf32>
    %149 = tpu.iota {dimensions = array<i32: 1>} : vector<8x128xi32>
    %c64_i32 = arith.constant 64 : i32
    %150 = vector.broadcast %c64_i32 : i32 to vector<8x128xi32>
    %151 = arith.cmpi slt, %149, %150 : vector<8x128xi32>
    %cst_39 = arith.constant 0xFF800000 : f32
    %152 = vector.broadcast %cst_39 : f32 to vector<8x128xf32>
    %153 = arith.select %151, %148, %152 : vector<8x128xi1>, vector<8x128xf32>
    %cst_40 = arith.constant dense<0xFF800000> : vector<8xf32>
    %154 = vector.multi_reduction <maximumf>, %153, %cst_40 [1] : vector<8x128xf32> to vector<8xf32>
    %155 = vector.shape_cast %154 : vector<8xf32> to vector<8x1xf32>
    %156 = vector.broadcast %155 : vector<8x1xf32> to vector<8x128xf32>
    %157 = arith.subf %148, %156 : vector<8x128xf32>
    %158 = math.exp %157 : vector<8x128xf32>
    %cst_41 = arith.constant 0.000000e+00 : f32
    %159 = vector.broadcast %cst_41 : f32 to vector<8x128xf32>
    %160 = arith.select %151, %158, %159 : vector<8x128xi1>, vector<8x128xf32>
    %cst_42 = arith.constant dense<0.000000e+00> : vector<8xf32>
    %161 = vector.multi_reduction <add>, %160, %cst_42 [1] : vector<8x128xf32> to vector<8xf32>
    %162 = vector.shape_cast %161 : vector<8xf32> to vector<8x1xf32>
    %163 = math.log %162 : vector<8x1xf32>
    %164 = vector.broadcast %163 : vector<8x1xf32> to vector<8x128xf32>
    %165 = arith.subf %157, %164 : vector<8x128xf32>
    %166 = vector.broadcast %10 : vector<1x128xf32> to vector<8x128xf32>
    %167 = arith.mulf %143, %166 : vector<8x128xf32>
    %cst_43 = arith.constant dense<0.000000e+00> : vector<8xf32>
    %168 = vector.multi_reduction <add>, %167, %cst_43 [1] : vector<8x128xf32> to vector<8xf32>
    %169 = vector.shape_cast %168 : vector<8xf32> to vector<8x1xf32>
    %170 = vector.broadcast %11 : vector<1x1xf32> to vector<8x1xf32>
    %171 = arith.addf %169, %170 : vector<8x1xf32>
    %172 = vector.shape_cast %171 : vector<8x1xf32> to vector<8x1xf32>
    %173 = vector.broadcast %172 : vector<8x1xf32> to vector<8x128xf32>
    %174 = arith.select %151, %165, %173 : vector<8x128xi1>, vector<8x128xf32>
    %c0_44 = arith.constant 0 : index
    %c0_45 = arith.constant 0 : index
    %175 = vector.load %arg6[%c0_44, %c0_45] : memref<8x128xf32, #tpu.memory_space<vmem>>, vector<8x128xf32>
    tpu.vector_store %arg6[%c0_44, %c0_45], %174 {strides = array<i32>} : memref<8x128xf32, #tpu.memory_space<vmem>>, vector<8x128xf32>,
    return
  }
  func.func @transform_0(%arg0: i32) -> (i32, i32) {
    %c0_i32 = arith.constant 0 : i32
    %c0_i32_0 = arith.constant 0 : i32
    return %arg0, %c0_i32 : i32, i32
  }
  func.func @transform_1(%arg0: i32) -> (i32, i32) {
    %c0_i32 = arith.constant 0 : i32
    %c0_i32_0 = arith.constant 0 : i32
    %c0_i32_1 = arith.constant 0 : i32
    return %c0_i32, %c0_i32_0 : i32, i32
  }
  func.func @transform_2(%arg0: i32) -> (i32, i32, i32) {
    %c0_i32 = arith.constant 0 : i32
    %c0_i32_0 = arith.constant 0 : i32
    %c0_i32_1 = arith.constant 0 : i32
    %c0_i32_2 = arith.constant 0 : i32
    return %c0_i32, %c0_i32_0, %c0_i32_1 : i32, i32, i32
  }
  func.func @transform_3(%arg0: i32) -> (i32, i32) {
    %c0_i32 = arith.constant 0 : i32
    %c0_i32_0 = arith.constant 0 : i32
    %c0_i32_1 = arith.constant 0 : i32
    return %c0_i32, %c0_i32_0 : i32, i32
  }
  func.func @transform_4(%arg0: i32) -> (i32, i32) {
    %c0_i32 = arith.constant 0 : i32
    %c0_i32_0 = arith.constant 0 : i32
    %c0_i32_1 = arith.constant 0 : i32
    return %c0_i32, %c0_i32_0 : i32, i32
  }
  func.func @transform_5(%arg0: i32) -> (i32, i32) {
    %c0_i32 = arith.constant 0 : i32
    %c0_i32_0 = arith.constant 0 : i32
    return %arg0, %c0_i32 : i32, i32
  }
}

</mosaic_0001>

<bundles_post_ra>
// kernel: othello_ppo_forward.1
= control target key start
LH: loop header
LB: loop body
LE: loop exit
PB: predicated region body
PF: predicated region fallthrough
CT: control target
= control target key end

     0   :  { %10 = vsyncpa [#allocation3], 0  ;;  %s1363_s0 = inlined_call_operand.hbm [shape: f32[8,64], index: 0, kind: input, shape index: {}]   ;;  %s1364_s1 = inlined_call_operand.hbm [shape: bf16[64,512], index: 1, kind: input, shape index: {}]   ;;  %s1365_s2 = inlined_call_operand.hbm [shape: bf16[2,256,128], index: 2, kind: input, shape index: {}]   ;;  %s1366_s3 = inlined_call_operand.hbm [shape: bf16[128,128], index: 3, kind: input, shape index: {}]   ;;  %s1367_s4 = inlined_call_operand.hbm [shape: f32[8,512], index: 4, kind: input, shape index: {}]   ;;  %s1368_s5 = inlined_call_operand.vmem [shape: f32[8,128], index: 5, kind: output, shape index: {}]  }
   0x1   :  { %11 = vsyncpa [#allocation5], 0 }
   0x2   :  { %12 = vsyncpa [#allocation8], 0  ;;  %s1237_s18 = smov [#allocation4]  }
   0x3   :  { %s28_s19 = sshll.u32 %s1237_s18, 4  ;;  %s29_s19 = int_to_ptr.vmem [resolvable:$true] %s28_s19 }
   0x4   :  { %s1139_s20 = scalar_lea.vmem %s29_s19, 2048  ;;  %p1144_p1 = scmp.lt.s32.totalorder %s29_s19, %s29_s19 }
   0x5   :  { %p1140_p0 = scmp.ne.s32.totalorder %s29_s19, %s1139_s20  ;;  %p1145_p2 = scmp.lt.s32.totalorder %s1139_s20, %s1139_s20 }
   0x7   :  { %p1146_p3 = por %p1145_p2, %p1144_p1 }
   0x9   :  { %p1147_p4 = pnand %p1146_p3, %p1140_p0 }
   0xb   :  { %1150 = shalt.err (!%p1147_p4)
}
   0xc   :  { %s1238_s21 = smov 256   ;;  %s1239_s22 = smov 16  }
   0xd   :  { %34 = dma.hbm_to_vmem [thread:$0]  %s1364_s1, 2048, %s29_s19, [#allocation5], %s1238_s21, %s1238_s21, %s1239_s22  }
   0xe   :  { %s1240_s25 = smov [#allocation7]   ;;  %s1241_s27 = smov [#allocation2]  }
   0xf   :  { %s52_s26 = sshll.u32 %s1240_s25, 4  ;;  %s19_s28 = sshll.u32 %s1241_s27, 4  ;;  %s53_s26 = int_to_ptr.vmem [resolvable:$true] %s52_s26  ;;  %s20_s28 = int_to_ptr.vmem [resolvable:$true] %s19_s28 }
  0x10   :  { %s1159_s29 = scalar_lea.vmem %s53_s26, 1024  ;;  %p1164_p6 = scmp.lt.s32.totalorder %s53_s26, %s53_s26 }
  0x11   :  { %p1160_p5 = scmp.ne.s32.totalorder %s53_s26, %s1159_s29  ;;  %p1165_p7 = scmp.lt.s32.totalorder %s1159_s29, %s1159_s29 }
  0x13   :  { %p1166_p8 = por %p1165_p7, %p1164_p6 }
  0x15   :  { %p1167_p9 = pnand %p1166_p8, %p1160_p5 }
  0x17   :  { %1170 = shalt.err (!%p1167_p9)
}
  0x18   :  { %s1242_s30 = smov 64   ;;  %s1243_s6 = smov 4  }
  0x19   :  { %58 = dma.hbm_to_vmem [thread:$0]  %s1366_s3, 1024, %s53_s26, [#allocation8], %s1242_s30, %s1242_s30, %s1243_s6  }
  0x1a   :  { %s1179_s1 = scalar_lea.vmem %s20_s28, 128  ;;  %p1184_p11 = scmp.lt.s32.totalorder %s20_s28, %s20_s28 }
  0x1b   :  { %p1180_p10 = scmp.ne.s32.totalorder %s20_s28, %s1179_s1  ;;  %p1185_p12 = scmp.lt.s32.totalorder %s1179_s1, %s1179_s1 }
  0x1d   :  { %p1186_p13 = por %p1185_p12, %p1184_p11 }
  0x1f   :  { %p1187_p0 = pnand %p1186_p13, %p1180_p10 }
  0x21   :  { %1190 = shalt.err (!%p1187_p0)
}
  0x22   :  { %22 = dma.hbm_to_vmem [thread:$0]  %s1363_s0, 128, %s20_s28, [#allocation3]  }
  0x23   :  { %s1244_s11 = smov [#allocation6]   ;;  %s1245_s13 = smov [#allocation9]  }
  0x24   :  { %s40_s12 = sshll.u32 %s1244_s11, 4  ;;  %s65_s14 = sshll.u32 %s1245_s13, 4  ;;  %s41_s12 = int_to_ptr.vmem [resolvable:$true] %s40_s12  ;;  %s66_s14 = int_to_ptr.vmem [resolvable:$true] %s65_s14 }
  0x25   :  { %s1199_s15 = scalar_lea.vmem %s41_s12, 4096  ;;  %p1204_p2 = scmp.lt.s32.totalorder %s41_s12, %s41_s12 }
  0x26   :  { %p1200_p1 = scmp.ne.s32.totalorder %s41_s12, %s1199_s15  ;;  %p1205_p3 = scmp.lt.s32.totalorder %s1199_s15, %s1199_s15 }
  0x28   :  { %p1206_p4 = por %p1205_p3, %p1204_p2 }
  0x2a   :  { %p1207_p5 = pnand %p1206_p4, %p1200_p1 }
  0x2c   :  { %1210 = shalt.err (!%p1207_p5)
}
  0x2d   :  { %46 = dma.hbm_to_vmem [thread:$0]  %s1365_s2, 4096, %s41_s12, [#allocation5], %s1242_s30, %s1242_s30, %s1243_s6  }
  0x2e   :  { %s1219_s17 = scalar_lea.vmem %s66_s14, 512  ;;  %p1224_p7 = scmp.lt.s32.totalorder %s66_s14, %s66_s14 }
  0x2f   :  { %p1220_p6 = scmp.ne.s32.totalorder %s66_s14, %s1219_s17  ;;  %p1225_p8 = scmp.lt.s32.totalorder %s1219_s17, %s1219_s17 }
  0x31   :  { %p1226_p9 = por %p1225_p8, %p1224_p7 }
  0x33   :  { %p1227_p10 = pnand %p1226_p9, %p1220_p6 }
  0x35   :  { %1230 = shalt.err (!%p1227_p10)
}
  0x36   :  { %68 = dma.hbm_to_vmem [thread:$0]  %s1367_s4, 512, %s66_s14, [#allocation8]  }
  0x37   :  { %1231 = dma.done.wait [#allocation3], 128  }
  0x38   :  { %1232 = vsyncadd [#allocation3], 4294967168 }
  0x39   :  { %1233 = dma.done.wait [#allocation5], 6144  }
  0x3a   :  { %1234 = vsyncadd [#allocation5], 4294961152 }
  0x3b   :  { %1235 = dma.done.wait [#allocation8], 1536  }
  0x3c   :  { %1236 = vsyncadd [#allocation8], 4294965760  ;;  %v1246_v0 = vmov 0   ;;  %v1055_v1 = vld [vmem:[#allocation4 + $0x64] ss:$16 sps:$4 sm:$0xff]   ;;  %v85_v9 = vld [vmem:[#allocation2] sm:$0xff]  ;;  %v107_v19 = vlaneseq }
  0x3d   :  { %239 = vmatprep.mubr.bf16.mxu1 %v1246_v0  ;;  %1053 = vset.pattern.permute.xlu1 %v1246_v0  ;;  %v1057_v2 = vld [vmem:[#allocation4 + $0x60] ss:$16 sps:$4 sm:$0xff]   ;;  %v1058_v3 = vld [vmem:[#allocation4 + $0x44] ss:$16 sps:$4 sm:$0xff]   ;;  %vm203_vm0 = vcmask 523264   ;;  %v86_v12 = vpack.c.bf16 %v85_v9, %v85_v9  ;;  %v1302_v23 = vld [vmem:[#allocation9 + $0x8] sm:$0xff] }
  0x3e   :  { %1054 = vset.pattern.permute.xlu0 %v1246_v0  ;;  %215 = vmatprep.subr.bf16.mxu1 %v1055_v1  ;;  %v1060_v4 = vld [vmem:[#allocation4 + $0x40] ss:$16 sps:$4 sm:$0xff]   ;;  %v1061_v5 = vld [vmem:[#allocation4 + $0x24] ss:$16 sps:$4 sm:$0xff]   ;;  %v1069_v10 = vld [vmem:[#allocation4 + $0x6c] ss:$16 sps:$4 sm:$0xff]  }
  0x3f   :  { %216 = vmatpush1.bf16.msra.mxu1 %v1057_v2  ;;  %v1063_v6 = vld [vmem:[#allocation4 + $0x20] ss:$16 sps:$4 sm:$0xff]   ;;  %v1064_v7 = vld [vmem:[#allocation4 + $0x4] ss:$16 sps:$4 sm:$0xff]   ;;  %v1067_v11 = vld [vmem:[#allocation4 + $0x68] ss:$16 sps:$4 sm:$0xff]  }
  0x40   :  { %217 = vmatprep.subr.bf16.mxu1 %v1058_v3  ;;  %v1066_v8 = vld [vmem:[#allocation4] ss:$16 sps:$4 sm:$0xff]   ;;  %v1072_v13 = vld [vmem:[#allocation4 + $0x4c] ss:$16 sps:$4 sm:$0xff]   ;;  %v1070_v14 = vld [vmem:[#allocation4 + $0x48] ss:$16 sps:$4 sm:$0xff]  }
  0x41   :  { %v1075_v15 = vld [vmem:[#allocation4 + $0x2c] ss:$16 sps:$4 sm:$0xff]   ;;  %v1073_v16 = vld [vmem:[#allocation4 + $0x28] ss:$16 sps:$4 sm:$0xff]   ;;  %v1297_v20 = vshrl.u32 %v107_v19, 7  ;;  %v1300_v22 = vld [vmem:[#allocation9] sm:$0xff] }
  0x42   :  { %v1078_v17 = vld [vmem:[#allocation4 + $0xc] ss:$16 sps:$4 sm:$0xff]   ;;  %v1076_v18 = vld [vmem:[#allocation4 + $0x8] ss:$16 sps:$4 sm:$0xff]   ;;  %v1306_v33 = vld [vmem:[#allocation9 + $0x10] sm:$0xff]  ;;  %vm1248_vm1 = vmmov 0  }
  0x43   :  { %218 = vmatpush1.bf16.msra.mxu1 %v1060_v4  ;;  %v109_v21 = vsub.s32 0, %v1297_v20  ;;  %v1308_v34 = vld [vmem:[#allocation9 + $0x18] sm:$0xff]  ;;  %v1081_v55 = vld [vmem:[#allocation6 + $0x70] sm:$0xff]   ;;  %v1083_v61 = vld [vmem:[#allocation6 + $0x68] sm:$0xff]  }
  0x44   :  { %219 = vmatprep.subr.bf16.mxu1 %v1061_v5  ;;  %v1079_v44 = vld [vmem:[#allocation6 + $0x78] sm:$0xff]   ;;  %v1082_v58 = vld [vmem:[#allocation6 + $0x30] sm:$0xff]   ;;  %v1084_v63 = vld [vmem:[#allocation6 + $0x28] sm:$0xff]  }
  0x45   :  { %v110_v24 = vrot.slane %v1300_v22, %v109_v21  ;;  %v114_v25 = vrot.slane %v1302_v23, %v109_v21  ;;  %v118_v35 = vrot.slane %v1306_v33, %v109_v21  ;;  %v122_v36 = vrot.slane %v1308_v34, %v109_v21  ;;  %v1080_v45 = vld [vmem:[#allocation6 + $0x38] sm:$0xff]   ;;  %968 = vmatprep.subr.bf16.mxu0 %v1079_v44  ;;  %v1086_v2 = vld [vmem:[#allocation6 + $0x20] sm:$0xff]   ;;  %v1094_v9 = vld [vmem:[#allocation6 + $0xb0] sm:$0xff]  }
  0x46   :  { %969 = vmatpush3.bf16.msra.mxu0 %v1080_v45  ;;  %v1088_v1 = vld [vmem:[#allocation6 + $0xf8] sm:$0xff]  }
  0x47   :  { %220 = vmatpush1.bf16.msra.mxu1 %v1063_v6  ;;  %970 = vmatprep.subr.bf16.mxu0 %v1081_v55  ;;  %v1090_v3 = vld [vmem:[#allocation6 + $0xb8] sm:$0xff]   ;;  %v1091_v6 = vld [vmem:[#allocation6 + $0x50] sm:$0xff]  }
  0x48   :  { %221 = vmatprep.subr.bf16.mxu1 %v1064_v7  ;;  %v1087_v4 = vld [vmem:[#allocation6 + $0x58] sm:$0xff]   ;;  %v1092_v7 = vld [vmem:[#allocation6 + $0xf0] sm:$0xff]  }
  0x49   :  { %v1089_v5 = vld [vmem:[#allocation6 + $0x18] sm:$0xff]  }
  0x4a   :  { %971 = vmatpush3.bf16.msra.mxu0 %v1082_v58  ;;  %v1104_v21 = vld [vmem:[#allocation6 + $0x98] sm:$0xff]  }
  0x4b   :  { %222 = vmatpush1.bf16.msra.mxu1 %v1066_v8  ;;  %972 = vmatprep.subr.bf16.mxu0 %v1083_v61  ;;  %v1093_v8 = vld [vmem:[#allocation6 + $0x10] sm:$0xff]  }
  0x4c   :  { %256 = vmatprep.subr.bf16.mxu1 %v1069_v10  ;;  %v1095_v10 = vld [vmem:[#allocation6 + $0x48] sm:$0xff]  }
  0x4e   :  { %926 = vmatmul.mubr.msk.bf16.vlgmr.msra.gmra.mxu1 %vm203_vm0, %v86_v12  ;;  %973 = vmatpush3.bf16.msra.mxu0 %v1084_v63 }
  0x4f   :  { %257 = vmatpush1.bf16.msra.mxu1 %v1067_v11  ;;  %280 = vmatprep.mubr.bf16.mxu1 %v1246_v0  ;;  %v1085_v0 = vld [vmem:[#allocation6 + $0x60] sm:$0xff]   ;;  %v1096_v11 = vld [vmem:[#allocation6 + $0xe8] sm:$0xff]  }
  0x50   :  { %258 = vmatprep.subr.bf16.mxu1 %v1072_v13  ;;  %974 = vmatprep.subr.bf16.mxu0 %v1085_v0  ;;  %v1098_v13 = vld [vmem:[#allocation6 + $0xa8] sm:$0xff]  }
  0x52   :  { %975 = vmatpush3.bf16.msra.mxu0 %v1086_v2 }
  0x53   :  { %259 = vmatpush1.bf16.msra.mxu1 %v1070_v14  ;;  %976 = vmatprep.subr.bf16.mxu0 %v1087_v4  ;;  %v1099_v14 = vld [vmem:[#allocation6 + $0x40] sm:$0xff]  }
  0x54   :  { %260 = vmatprep.subr.bf16.mxu1 %v1075_v15  ;;  %v1100_v15 = vld [vmem:[#allocation6 + $0xe0] sm:$0xff]  }
  0x56   :  { %977 = vmatpush3.bf16.msra.mxu0 %v1089_v5 }
  0x57   :  { %261 = vmatpush1.bf16.msra.mxu1 %v1073_v16  ;;  %978 = vmatprep.subr.bf16.mxu0 %v1091_v6  ;;  %v1101_v16 = vld [vmem:[#allocation6] sm:$0xff]  }
  0x58   :  { %262 = vmatprep.subr.bf16.mxu1 %v1078_v17  ;;  %v1102_v17 = vld [vmem:[#allocation6 + $0xa0] sm:$0xff]  }
  0x5a   :  { %979 = vmatpush3.bf16.msra.mxu0 %v1093_v8  ;;  %v402_v8 = vsub.s32 3, %v1297_v20 }
  0x5b   :  { %263 = vmatpush1.bf16.msra.mxu1 %v1076_v18  ;;  %980 = vmatprep.subr.bf16.mxu0 %v1095_v10  ;;  %v1103_v18 = vld [vmem:[#allocation6 + $0xd8] sm:$0xff]  }
  0x5c   :  { %990 = vmatprep.subr.bf16.mxu1 %v1088_v1 }
  0x5e   :  { %927 = vmatmul.mubr.msk.bf16.vlgmr.msra.gmra.mxu1 %vm203_vm0, %v86_v12  ;;  %v1097_v12 = vld [vmem:[#allocation6 + $0x8] sm:$0xff]  }
  0x5f   :  { %991 = vmatpush3.bf16.msra.mxu1 %v1090_v3  ;;  %981 = vmatpush3.bf16.msra.mxu0 %v1097_v12 }
  0x60   :  { %992 = vmatprep.subr.bf16.mxu1 %v1092_v7  ;;  %982 = vmatprep.subr.bf16.mxu0 %v1099_v14 }
  0x63   :  { %993 = vmatpush3.bf16.msra.mxu1 %v1094_v9  ;;  %983 = vmatpush3.bf16.msra.mxu0 %v1101_v16 }
  0x64   :  { %994 = vmatprep.subr.bf16.mxu1 %v1096_v11 }
  0x67   :  { %995 = vmatpush3.bf16.msra.mxu1 %v1098_v13  ;;  %v578_v13 = vrot.slane %v1302_v23, %v402_v8 }
  0x68   :  { %996 = vmatprep.subr.bf16.mxu1 %v1100_v15 }
  0x6b   :  { %997 = vmatpush3.bf16.msra.mxu1 %v1102_v17 }
  0x6c   :  { %998 = vmatprep.subr.bf16.mxu1 %v1103_v18 }
  0x6f   :  { %999 = vmatpush3.bf16.msra.mxu1 %v1104_v21  ;;  %v1111_v21 = vld [vmem:[#allocation7 + $0x38] sm:$0xff]  }
 0x10e   :  { %v241_v26 = vpop.f32.mrf.mxu1 }
 0x10f   :  { %v242_v28 = vadd.f32 %v241_v26, %v110_v24  ;;  %v1105_v24 = vld [vmem:[#allocation6 + $0xd0] sm:$0xff]   ;;  %v1107_v26 = vld [vmem:[#allocation6 + $0xc8] sm:$0xff]  }
 0x110   :  { %v243_v27 = vpop.f32.mrf.mxu1  ;;  %1000 = vmatprep.subr.bf16.mxu1 %v1105_v24  ;;  %v1247_v24 = vmov 0.0  }
 0x111   :  { %v244_v29 = vadd.f32 %v243_v27, %v114_v25  ;;  %v1106_v25 = vld [vmem:[#allocation6 + $0x90] sm:$0xff]   ;;  %v1108_v27 = vld [vmem:[#allocation6 + $0x88] sm:$0xff]   ;;  %1021 = vmatprep.subr.bf16.mxu0 %v1247_v24 }
 0x112   :  { %v245_v30 = vpop.f32.mrf.mxu1  ;;  %1001 = vmatpush3.bf16.msra.mxu1 %v1106_v25 }
 0x113   :  { %v289_v31 = vadd.f32 %v244_v29, %v242_v28  ;;  %1002 = vmatprep.subr.bf16.mxu1 %v1107_v26 }
 0x114   :  { %v246_v32 = vpop.f32.mrf.mxu1 }
 0x115   :  { %290 = vadd.xlane.f32.xlu0 %v289_v31 }
 0x116   :  { %1003 = vmatpush3.bf16.msra.mxu1 %v1108_v27 }
 0x11e   :  { %v282_v37 = vpop.f32.mrf.mxu1 }
 0x11f   :  { %v283_v38 = vadd.f32 %v282_v37, %v118_v35  ;;  %v308_v35 = vsub.s32 1, %v1297_v20 }
 0x120   :  { %v284_v39 = vpop.f32.mrf.mxu1 }
 0x121   :  { %v285_v40 = vadd.f32 %v284_v39, %v122_v36  ;;  %v318_v36 = vsub.s32 2, %v1297_v20  ;;  %v313_v39 = vrot.slane %v1302_v23, %v308_v35 }
 0x122   :  { %v286_v41 = vpop.f32.mrf.mxu1 }
 0x123   :  { %v328_v42 = vadd.f32 %v285_v40, %v283_v38 }
 0x124   :  { %v287_v43 = vpop.f32.mrf.mxu1 }
 0x125   :  { %329 = vadd.xlane.f32.xlu1 %v328_v42  ;;  %v323_v42 = vrot.slane %v1302_v23, %v318_v36 }
 0x19e   :  { %v291_v46 = vpop.xlane.xlu0 %290 }
 0x19f   :  { %v293_v47 = vmul.f32 0.00390625, %v291_v46  ;;  %v319_v46 = vrot.slane %v1300_v22, %v318_v36 }
 0x1a1   :  { %v1312_v48 = vsub.f32 %v242_v28, %v293_v47  ;;  %v1314_v49 = vsub.f32 %v244_v29, %v293_v47  ;;  %v1109_v28 = vld [vmem:[#allocation6 + $0xc0] sm:$0xff]  }
 0x1a2   :  { %v1110_v29 = vld [vmem:[#allocation6 + $0x80] sm:$0xff]   ;;  %1004 = vmatprep.subr.bf16.mxu1 %v1109_v28 }
 0x1a3   :  { %v296_v50 = vmul.f32 %v1312_v48, %v1312_v48  ;;  %v297_v51 = vmul.f32 %v1314_v49, %v1314_v49  ;;  %1005 = vmatpush3.bf16.msra.mxu1 %v1110_v29 }
 0x1a5   :  { %v298_v52 = vadd.f32 %v297_v51, %v296_v50 }
 0x1a7   :  { %299 = vadd.xlane.f32.xlu0 %v298_v52 }
 0x1ae   :  { %v330_v53 = vpop.xlane.xlu1 %329 }
 0x1af   :  { %v331_v54 = vmul.f32 0.00390625, %v330_v53 }
 0x1b1   :  { %v1320_v56 = vsub.f32 %v283_v38, %v331_v54  ;;  %v1322_v57 = vsub.f32 %v285_v40, %v331_v54  ;;  %v309_v40 = vrot.slane %v1300_v22, %v308_v35 }
 0x1b3   :  { %v334_v59 = vmul.f32 %v1320_v56, %v1320_v56  ;;  %v335_v60 = vmul.f32 %v1322_v57, %v1322_v57 }
 0x1b5   :  { %v336_v62 = vadd.f32 %v335_v60, %v334_v59  ;;  %v347_v59 = vrot.slane %v1306_v33, %v308_v35  ;;  %v351_v60 = vrot.slane %v1308_v34, %v308_v35  ;;  %v1113_v35 = vld [vmem:[#allocation7 + $0x28] sm:$0xff]  }
 0x1b7   :  { %337 = vadd.xlane.f32.xlu1 %v336_v62  ;;  %v361_v62 = vrot.slane %v1308_v34, %v318_v36 }
 0x230   :  { %v300_v30 = vpop.xlane.xlu0 %299 }
 0x231   :  { %v301_v31 = vmul.f32 0.00390625, %v300_v30  ;;  %v1112_v30 = vld [vmem:[#allocation7 + $0x30] sm:$0xff]  }
 0x233   :  { %v302_v32 = vadd.f32 1e-05, %v301_v31 }
 0x235   :  { %1119 = vrsqrt.f32 %v302_v32 }
 0x240   :  { %v338_v37 = vpop.xlane.xlu1 %337 }
 0x241   :  { %v339_v38 = vmul.f32 0.00390625, %v338_v37  ;;  %v1114_v37 = vld [vmem:[#allocation7 + $0x20] sm:$0xff]  }
 0x242   :  { %v1120_v41 = vpop.eup %1119 }
 0x243   :  { %v340_v43 = vadd.f32 1e-05, %v339_v38  ;;  %v305_v44 = vmul.f32 %v1120_v41, %v1314_v49  ;;  %v304_v45 = vmul.f32 %v1120_v41, %v1312_v48  ;;  %v357_v48 = vrot.slane %v1306_v33, %v318_v36  ;;  %v1115_v38 = vld [vmem:[#allocation7 + $0x18] sm:$0xff]   ;;  %v1118_v41 = vld [vmem:[#allocation7] sm:$0xff]  }
 0x244   :  { %v403_v33 = vrot.slane %v1300_v22, %v402_v8 }
 0x245   :  { %1121 = vrsqrt.f32 %v340_v43  ;;  %v315_v47 = vmul.f32 %v313_v39, %v305_v44  ;;  %v314_v50 = vmul.f32 %v309_v40, %v304_v45  ;;  %v1116_v39 = vld [vmem:[#allocation7 + $0x10] sm:$0xff]   ;;  %v1117_v40 = vld [vmem:[#allocation7 + $0x8] sm:$0xff]   ;;  %v729_v45 = vsub.s32 4, %v1297_v20 }
 0x247   :  { %v325_v51 = vadd.f32 %v323_v42, %v315_v47  ;;  %v324_v52 = vadd.f32 %v319_v46, %v314_v50  ;;  %v734_v46 = vsub.s32 5, %v1297_v20 }
 0x249   :  { %v327_v53 = vmax.f32 %v325_v51, 0.0  ;;  %v326_v54 = vmax.f32 %v324_v52, 0.0  ;;  %v730_v51 = vrot.slane %v1300_v22, %v729_v45 }
 0x24b   :  { %v367_v55 = vpack.c.bf16 %v327_v53, %v327_v53  ;;  %v366_v58 = vpack.c.bf16 %v326_v54, %v326_v54 }
 0x24d   :  { %532 = vmatprep.mubr.bf16.mxu0 %v367_v55  ;;  %v735_v55 = vrot.slane %v1300_v22, %v734_v46 }
 0x24e   :  { %533 = vmatmul.mubr.bf16.vlgmr.msra.gmra.mxu0 %v366_v58 }
 0x24f   :  { %1022 = vmatpush3.bf16.msra.mxu0 %v1111_v21  ;;  %1037 = vmatprep.mubr.msk.bf16.mxu0 %vm1248_vm1, %v1247_v24 }
 0x250   :  { %1023 = vmatprep.subr.bf16.mxu0 %v1247_v24 }
 0x252   :  { %v1122_v49 = vpop.eup %1121 }
 0x253   :  { %v343_v61 = vmul.f32 %v1122_v49, %v1322_v57  ;;  %v342_v63 = vmul.f32 %v1122_v49, %v1320_v56  ;;  %1024 = vmatpush3.bf16.msra.mxu0 %v1112_v30 }
 0x254   :  { %1025 = vmatprep.subr.bf16.mxu0 %v1247_v24 }
 0x255   :  { %v353_v0 = vmul.f32 %v351_v60, %v343_v61  ;;  %v352_v1 = vmul.f32 %v347_v59, %v342_v63  ;;  %v757_v63 = vrot.slane %v1302_v23, %v734_v46 }
 0x257   :  { %v363_v2 = vadd.f32 %v361_v62, %v353_v0  ;;  %v362_v3 = vadd.f32 %v357_v48, %v352_v1  ;;  %1026 = vmatpush3.bf16.msra.mxu0 %v1113_v35  ;;  %v752_v48 = vrot.slane %v1302_v23, %v729_v45  ;;  %v886_v0 = vsub.s32 7, %v1297_v20 }
 0x258   :  { %1027 = vmatprep.subr.bf16.mxu0 %v1247_v24 }
 0x259   :  { %v365_v4 = vmax.f32 %v363_v2, 0.0  ;;  %v364_v5 = vmax.f32 %v362_v3, 0.0  ;;  %v887_v3 = vrot.slane %v1300_v22, %v886_v0 }
 0x25b   :  { %v541_v6 = vpack.c.bf16 %v365_v4, %v365_v4  ;;  %v540_v7 = vpack.c.bf16 %v364_v5, %v364_v5  ;;  %1028 = vmatpush3.bf16.msra.mxu0 %v1114_v37 }
 0x25c   :  { %1029 = vmatprep.subr.bf16.mxu0 %v1247_v24 }
 0x25d   :  { %707 = vmatprep.mubr.bf16.mxu1 %v541_v6  ;;  %v894_v6 = vrot.slane %v1302_v23, %v886_v0 }
 0x25e   :  { %708 = vmatmul.mubr.bf16.vlgmr.msra.gmra.mxu1 %v540_v7 }
 0x25f   :  { %1030 = vmatpush3.bf16.msra.mxu0 %v1115_v38 }
 0x260   :  { %1031 = vmatprep.subr.bf16.mxu0 %v1247_v24 }
 0x263   :  { %1032 = vmatpush3.bf16.msra.mxu0 %v1116_v39 }
 0x264   :  { %1033 = vmatprep.subr.bf16.mxu0 %v1247_v24 }
 0x267   :  { %1034 = vmatpush3.bf16.msra.mxu0 %v1117_v40 }
 0x268   :  { %1035 = vmatprep.subr.bf16.mxu0 %v1247_v24 }
 0x26b   :  { %1036 = vmatpush3.bf16.msra.mxu0 %v1118_v41 }
 0x30e   :  { %v984_v9 = vpop.f32.mrf.mxu0 }
 0x310   :  { %v985_v57 = vpop.f32.mrf.mxu0 }
 0x311   :  { %v986_v10 = vadd.f32 %v985_v57, %v984_v9  ;;  %v779_v9 = vsub.s32 6, %v1297_v20 }
 0x312   :  { %v987_v34 = vpop.f32.mrf.mxu0 }
 0x313   :  { %v535_v11 = vadd.f32 %v986_v10, %v403_v33  ;;  %v870_v33 = vand.u32 127, %v107_v19  ;;  %v780_v57 = vrot.slane %v1300_v22, %v779_v9 }
 0x314   :  { %v988_v56 = vpop.f32.mrf.mxu0 }
 0x315   :  { %715 = vadd.xlane.f32.xlu0 %v535_v11  ;;  %vm871_vm2 = vcmp.lt.s32.totalorder %v870_v33, 64 }
 0x31e   :  { %v1006_v12 = vpop.f32.mrf.mxu1 }
 0x320   :  { %v1007_v14 = vpop.f32.mrf.mxu1 }
 0x321   :  { %v1008_v15 = vadd.f32 %v1007_v14, %v1006_v12 }
 0x322   :  { %v1009_v16 = vpop.f32.mrf.mxu1 }
 0x323   :  { %v710_v17 = vadd.f32 %v1008_v15, %v578_v13 }
 0x324   :  { %v1010_v18 = vpop.f32.mrf.mxu1 }
 0x325   :  { %738 = vadd.xlane.f32.xlu0 %v710_v17 }
 0x39e   :  { %v716_v25 = vpop.xlane.xlu0 %715 }
 0x39f   :  { %v718_v26 = vmul.f32 0.0078125, %v716_v25 }
 0x3a1   :  { %v719_v27 = vsub.f32 %v535_v11, %v718_v26 }
 0x3a3   :  { %v720_v28 = vmul.f32 %v719_v27, %v719_v27 }
 0x3a5   :  { %721 = vadd.xlane.f32.xlu1 %v720_v28 }
 0x3ae   :  { %v739_v29 = vpop.xlane.xlu0 %738 }
 0x3af   :  { %v740_v31 = vmul.f32 0.0078125, %v739_v29 }
 0x3b1   :  { %v741_v32 = vsub.f32 %v710_v17, %v740_v31 }
 0x3b3   :  { %v742_v36 = vmul.f32 %v741_v32, %v741_v32 }
 0x3b5   :  { %743 = vadd.xlane.f32.xlu1 %v742_v36 }
 0x42e   :  { %v722_v42 = vpop.xlane.xlu1 %721 }
 0x42f   :  { %v723_v43 = vmul.f32 0.0078125, %v722_v42 }
 0x431   :  { %v724_v44 = vadd.f32 1e-05, %v723_v43 }
 0x433   :  { %1123 = vrsqrt.f32 %v724_v44 }
 0x43e   :  { %v744_v47 = vpop.xlane.xlu1 %743 }
 0x43f   :  { %v745_v50 = vmul.f32 0.0078125, %v744_v47 }
 0x440   :  { %v1124_v52 = vpop.eup %1123 }
 0x441   :  { %v746_v53 = vadd.f32 1e-05, %v745_v50  ;;  %v726_v54 = vmul.f32 %v1124_v52, %v719_v27 }
 0x443   :  { %1125 = vrsqrt.f32 %v746_v53  ;;  %v731_v58 = vmul.f32 %v730_v51, %v726_v54 }
 0x445   :  { %v736_v59 = vadd.f32 %v735_v55, %v731_v58 }
 0x447   :  { %v737_v60 = vmax.f32 %v736_v59, 0.0 }
 0x449   :  { %v760_v49 = vpack.c.bf16 %v737_v60, %v737_v60 }
 0x44b   :  { %1038 = vmatmul.mubr.bf16.vlgmr.msra.gmra.mxu0 %v760_v49 }
 0x450   :  { %v1126_v61 = vpop.eup %1125 }
 0x451   :  { %v748_v62 = vmul.f32 %v1126_v61, %v741_v32 }
 0x453   :  { %v753_v1 = vmul.f32 %v752_v48, %v748_v62 }
 0x455   :  { %v758_v2 = vadd.f32 %v757_v63, %v753_v1 }
 0x457   :  { %v759_v4 = vmax.f32 %v758_v2, 0.0 }
 0x459   :  { %v888_v5 = vmul.f32 %v887_v3, %v759_v4 }
 0x45b   :  { %889 = vadd.xlane.f32.xlu1 %v888_v5 }
 0x4e4   :  { %v890_v7 = vpop.xlane.xlu1 %889 }
 0x4e5   :  { %v895_v8 = vadd.f32 %v894_v6, %v890_v7 }
 0x4e7   :  { %898 = vperm.xlu1 %1053, %v895_v8  }
 0x50b   :  { %v863_v10 = vpop.f32.mrf.mxu0 }
 0x50c   :  { %v864_v34 = vadd.f32 %v863_v10, %v780_v57 }
 0x50d   :  { %v1039_v11 = vpop.f32.mrf.mxu0 }
 0x50e   :  { %v872_v56 = vsel %vm871_vm2, %v864_v34, -inf }
 0x50f   :  { %873 = vmax.xlane.f32.xlu0 %v872_v56  ;;  %v866_v12 = vpop.f32.mrf.mxu0 }
 0x511   :  { %v1040_v13 = vpop.f32.mrf.mxu0 }
 0x562   :  { %v899_v21 = vpop.permute.xlu1 %898 }
 0x598   :  { %v874_v14 = vpop.xlane.xlu0 %873 }
 0x599   :  { %v875_v23 = vsub.f32 %v864_v34, %v874_v14 }
 0x59b   :  { %v876_v15 = vmul.f32 1.442695, %v875_v23 }
 0x59d   :  { %1127 = vpow2.f32 %v876_v15 }
 0x5aa   :  { %v1128_v16 = vpop.eup %1127 }
 0x5ab   :  { %v878_v20 = vsel %vm871_vm2, %v1128_v16, 0.0 }
 0x5ac   :  { %879 = vadd.xlane.f32.xlu0 %v878_v20 }
 0x635   :  { %v880_v19 = vpop.xlane.xlu0 %879 }
 0x636   :  { %1129 = vlog2.f32 %v880_v19 }
 0x643   :  { %v1130_v22 = vpop.eup %1129 }
 0x644   :  { %v882_v17 = vmul.f32 0.6931472, %v1130_v22 }
 0x646   :  { %v883_v18 = vsub.f32 %v875_v23, %v882_v17 }
 0x648   :  { %v901_v24 = vsel %vm871_vm2, %v883_v18, %v899_v21 }
 0x649   :  { %902 = vst [vmem:[%s1368_s5] sm:$0xff] %v901_v24 }
 0x64a   :  { %907 = vsyncpa [#allocation3], 1 }
 0x64b   :  { %908 = vsyncpa [#allocation5], 1 }
 0x64c   :  { %909 = vsyncpa [#allocation8], 1 }

</bundles_post_ra>
